<compile_context>
chip_gen: v5e
topology: v5e:2x2
jax: 0.10.0
libtpu: 0.0.40
codegen_flags: <defaults>
</compile_context>

<pallas_src>
import jax
import jax.numpy as jnp
from jax.experimental import pallas as pl
from jax.experimental.pallas import tpu as pltpu


# ---------------------------------------------------------------------------
# Generation-aware sizing (v5e/v6e: 128 MiB physical VMEM, v7x: 64 MiB)
# ---------------------------------------------------------------------------
def _vmem_capacity_bytes():
    try:
        return int(pltpu.get_tpu_info().vmem_capacity_bytes)
    except Exception:
        return 64 << 20                       # conservative (v7x-sized) default


_VMEM_CAP = _vmem_capacity_bytes()
# (input + output) block bytes per grid step; x2 double-buffered stays
# ~<=12 MiB on v7x and ~<=24 MiB on v5e/v6e.
_BLOCK_BUDGET = int(min(_VMEM_CAP // 10, 12 << 20))
# Scoped-VMEM limit we request (raises v5e's 16 MiB default, stays < physical).
_VMEM_LIMIT = int(min(_VMEM_CAP * 3 // 4, 64 << 20))


# ---------------------------------------------------------------------------
# Small helpers
# ---------------------------------------------------------------------------
def _triple(v):
    if isinstance(v, (tuple, list)):
        assert len(v) == 3, v
        return tuple(int(t) for t in v)
    return (int(v),) * 3


def _round_up(n, m):
    return (n + m - 1) // m * m


def _largest_divisor(n, cap, multiple_of):
    """Largest divisor of n that is <= cap and a multiple of `multiple_of`."""
    cap = min(cap, n)
    start = (cap // multiple_of) * multiple_of
    for d in range(start, 0, -multiple_of):
        if n % d == 0:
            return d
    return None


def _pick_lane_tile(n, row_bytes, budget_bytes):
    """Lane tile: a 128-multiple sized so one (in+out) block ~= the VMEM budget."""
    cap = max(128, (budget_bytes // max(row_bytes, 1)) // 128 * 128)
    if n <= cap:
        return n                              # full extent: always a legal block
    for step in (512, 128):
        d = _largest_divisor(n, cap, step)
        if d is not None and d >= cap // 2:
            return d                          # large divisor: no masked tail
    return cap                                # cdiv grid with a masked tail block


def _at_least_two_steps(n, tile):
    """Shrink the tile so the grid has >=2 steps (v7x megacore / DMA pipelining)."""
    if n < 256 or pl.cdiv(n, tile) >= 2:
        return tile
    return max(128, _round_up(pl.cdiv(n, 2), 128))


def _ds(start, size, stride):
    return pl.ds(start, size) if stride == 1 else pl.ds(start, size, stride)


def _pad_lanes(a):
    """Pad the trailing (lane) axis up to one full vreg (128) when narrower."""
    r = a.shape[-1]
    if r >= 128:
        return a, r
    pad = [(0, 0)] * (a.ndim - 1) + [(0, 128 - r)]
    return jnp.pad(a, pad), 128


# ---------------------------------------------------------------------------
# Stage 1: channel-window max (lane axis = flattened D*H*W)
# ---------------------------------------------------------------------------
def _make_channel_pool_kernel(c_out, kc, sc):
    def kernel(x_ref, o_ref):
        # Slab form: kc full-occupancy [bb, c_out, ts] maxes, one dense store
        # (no per-output-channel row slices, no sublane concatenate).
        def slab(l):                          # rows l, l+sc, ..., l+(c_out-1)*sc
            if c_out == 1:
                return x_ref[:, pl.ds(l, 1), :]
            return x_ref[:, _ds(l, c_out, sc), :]

        acc = slab(0)
        for l in range(1, kc):                # static, small
            acc = jnp.maximum(acc, slab(l))
        o_ref[...] = acc
    return kernel


def _channel_pool(x3, kc, sc, c_out):
    B, C, S = x3.shape
    itemsize = x3.dtype.itemsize
    # in + out bytes per lane element, with sublane padding to 8.
    row_bytes = (_round_up(C, 8) + _round_up(c_out, 8)) * itemsize
    ts = _pick_lane_tile(S, row_bytes, _BLOCK_BUDGET)
    if B == 1:
        ts = _at_least_two_steps(S, ts)
    n_s = pl.cdiv(S, ts)

    # Amortize the ~0.35us per-grid-step overhead when S is small by blocking
    # several batches per step, but keep >=2 grid steps when B >= 2.
    bb = 1
    if n_s == 1 and B > 1:
        step_bytes = row_bytes * ts
        target = max(1 << 20, _BLOCK_BUDGET // 4)
        bb = max(1, min(B // 2, target // max(step_bytes, 1)))
        while bb > 1 and B % bb:
            bb -= 1
    grid = (pl.cdiv(B, bb), n_s)

    return pl.pallas_call(
        _make_channel_pool_kernel(c_out, kc, sc),
        grid=grid,
        in_specs=[pl.BlockSpec((bb, C, ts), lambda b, s: (b, 0, s))],
        out_specs=pl.BlockSpec((bb, c_out, ts), lambda b, s: (b, 0, s)),
        out_shape=jax.ShapeDtypeStruct((B, c_out, S), x3.dtype),
        compiler_params=pltpu.CompilerParams(
            dimension_semantics=("parallel", "parallel"),
            vmem_limit_bytes=_VMEM_LIMIT),
    )(x3)


# ---------------------------------------------------------------------------
# Stage 2a: spatial pooling, non-overlapping windows (stride == kernel)
#           layout [kh*kw, Ho, Wo, R] -> kh*kw contiguous slab maxes
# ---------------------------------------------------------------------------
def _make_window_slab_max_kernel(n_taps):
    def kernel(y_ref, o_ref):
        acc = y_ref[0]
        for t in range(1, n_taps):            # static, small
            acc = jnp.maximum(acc, y_ref[t])
        o_ref[...] = acc
    return kernel


def _spatial_pool_nonoverlap(y4):
    n_taps, HO, WO, R = y4.shape
    itemsize = y4.dtype.itemsize
    row_bytes = (n_taps + 1) * HO * _round_up(WO, 8) * itemsize
    tr = _pick_lane_tile(R, row_bytes, _BLOCK_BUDGET)
    tr = _at_least_two_steps(R, tr)
    return pl.pallas_call(
        _make_window_slab_max_kernel(n_taps),
        grid=(pl.cdiv(R, tr),),
        in_specs=[pl.BlockSpec((n_taps, HO, WO, tr), lambda r: (0, 0, 0, r))],
        out_specs=pl.BlockSpec((HO, WO, tr), lambda r: (0, 0, r)),
        out_shape=jax.ShapeDtypeStruct((HO, WO, R), y4.dtype),
        compiler_params=pltpu.CompilerParams(
            dimension_semantics=("parallel",),
            vmem_limit_bytes=_VMEM_LIMIT),
    )(y4)


# ---------------------------------------------------------------------------
# Stage 2b: spatial pooling, general (overlapping / stride != kernel) case
#           layout [H, W, R] -> kh*kw strided window taps
# ---------------------------------------------------------------------------
def _make_spatial_tap_kernel(kh, kw, sh, sw, ho, wo):
    def kernel(y_ref, o_ref):
        acc = None
        for i in range(kh):                   # static window loops
            for j in range(kw):
                win = y_ref[_ds(i, ho, sh), _ds(j, wo, sw), :]   # [ho, wo, tr]
                acc = win if acc is None else jnp.maximum(acc, win)
        o_ref[...] = acc
    return kernel


def _spatial_pool_general(y3, kh, kw, sh, sw, ho, wo):
    HH, WW, R = y3.shape
    itemsize = y3.dtype.itemsize
    row_bytes = (HH * _round_up(WW, 8) + ho * _round_up(wo, 8)) * itemsize
    tr = _pick_lane_tile(R, row_bytes, _BLOCK_BUDGET)
    tr = _at_least_two_steps(R, tr)
    # TODO(synk): for very large H*W, additionally tile H over output-row chunks
    # with a (kh - sh)-row halo instead of keeping the full (H, W) slab resident.
    return pl.pallas_call(
        _make_spatial_tap_kernel(kh, kw, sh, sw, ho, wo),
        grid=(pl.cdiv(R, tr),),
        in_specs=[pl.BlockSpec((HH, WW, tr), lambda r: (0, 0, r))],
        out_specs=pl.BlockSpec((ho, wo, tr), lambda r: (0, 0, r)),
        out_shape=jax.ShapeDtypeStruct((ho, wo, R), y3.dtype),
        compiler_params=pltpu.CompilerParams(
            dimension_semantics=("parallel",),
            vmem_limit_bytes=_VMEM_LIMIT),
    )(y3)


# ---------------------------------------------------------------------------
# Forward
# ---------------------------------------------------------------------------
def channel_max_pooling_3d(x, kernel_size, stride):
    kh, kw, kc = _triple(kernel_size)
    sh, sw, sc = _triple(stride)
    B, C, D, H, W = x.shape
    c_out = (C - kc) // sc + 1
    h_out = (H - kh) // sh + 1
    w_out = (W - kw) // sw + 1

    # ---- Stage 1: channel-window max (skipped when it is the identity) ----
    if kc == 1 and sc == 1:
        y = x                                                   # c_out == C
    else:
        y3 = _channel_pool(x.reshape(B, C, D * H * W), kc, sc, c_out)
        y = y3.reshape(B, c_out, D, H, W)

    if (kh, kw, sh, sw) == (1, 1, 1, 1):                        # CMD hot path
        return y

    # ---- Stage 2: spatial (H, W) window max, lane axis = B*c_out*D ----
    R = B * c_out * D
    if kh == sh and kw == sw:
        # Non-overlapping windows: pre-split (H, W) into (ho, kh)(wo, kw) during
        # the (already copy-materializing) wrapper transpose so the kernel does
        # kh*kw contiguous, lane-dense slab maxes -- no strided/masked taps.
        y7 = y[:, :, :, : h_out * kh, : w_out * kw].reshape(
            B, c_out, D, h_out, kh, w_out, kw)
        yt = jnp.transpose(y7, (4, 6, 3, 5, 0, 1, 2)).reshape(
            kh * kw, h_out, w_out, R)
        yt, Rp = _pad_lanes(yt)                                 # lane-density guard
        z = _spatial_pool_nonoverlap(yt)
    else:
        yt = jnp.transpose(y, (3, 4, 0, 1, 2)).reshape(H, W, R)
        yt, Rp = _pad_lanes(yt)
        z = _spatial_pool_general(yt, kh, kw, sh, sw, h_out, w_out)
    if Rp != R:
        z = z[..., :R]
    # TODO(synk): fuse away the two wrapper transposes on this (cold) path; doing
    # so needs an in-kernel lane re-layout since W / W_out alone are < 128 lanes.
    z = jnp.transpose(z.reshape(h_out, w_out, B, c_out, D), (2, 3, 4, 0, 1))
    return z                                                    # [B,co,D,Ho,Wo]


class ChannelMaxPooling3D:
    """Pallas/TPU port of the PyTorch ChannelMaxPooling3D module."""

    def __init__(self, kernel_size, stride):
        self.kernel_size = _triple(kernel_size)
        self.stride = _triple(stride)

    def __call__(self, x):
        return channel_max_pooling_3d(x, self.kernel_size, self.stride)


# ---------------------------------------------------------------------------
# Pure-JAX reference (permute -> MaxPool3d -> permute back)
# ---------------------------------------------------------------------------
def _reference(x, kernel_size, stride):
    kh, kw, kc = _triple(kernel_size)
    sh, sw, sc = _triple(stride)
    if jnp.issubdtype(x.dtype, jnp.floating):
        init = jnp.array(-jnp.inf, dtype=x.dtype)
    else:
        init = jnp.array(jnp.iinfo(x.dtype).min, dtype=x.dtype)
    xp = jnp.transpose(x, (0, 2, 3, 4, 1))                      # [B,D,H,W,C]
    pooled = jax.lax.reduce_window(
        xp, init, jax.lax.max,
        window_dimensions=(1, 1, kh, kw, kc),
        window_strides=(1, 1, sh, sw, sc),
        padding="VALID")
    return jnp.transpose(pooled, (0, 4, 1, 2, 3))


if __name__ == "__main__":
    B, C, D, H, W = 2, 4, 8, 16, 16
    x = jax.random.normal(jax.random.PRNGKey(0), (B, C, D, H, W), dtype=jnp.float32)

    # Config 1: pure channel max pooling -- the CMD_module usage pattern
    # (kernel=(1,1,C), stride=(1,1,C)); single lane-dense kernel, no transposes.
    pool1 = ChannelMaxPooling3D(kernel_size=(1, 1, C), stride=(1, 1, C))
    out1 = jax.jit(pool1.__call__)(x)
    jax.block_until_ready(out1)
    assert out1.shape == (B, 1, D, H, W), out1.shape
    assert jnp.allclose(out1, _reference(x, (1, 1, C), (1, 1, C))), "config-1 mismatch"

    # Config 2: general non-overlapping 3-D window -- stage 1 + pre-split stage 2.
    ks, st = (2, 2, 2), (2, 2, 2)
    pool2 = ChannelMaxPooling3D(kernel_size=ks, stride=st)
    out2 = jax.jit(pool2.__call__)(x)
    jax.block_until_ready(out2)
    assert out2.shape == (B, 2, D, H // 2, W // 2), out2.shape
    assert jnp.allclose(out2, _reference(x, ks, st)), "config-2 mismatch"

    # Config 3: overlapping spatial window -- exercises the strided-tap fallback.
    ks3, st3 = (3, 3, 2), (2, 2, 2)
    pool3 = ChannelMaxPooling3D(kernel_size=ks3, stride=st3)
    out3 = jax.jit(pool3.__call__)(x)
    jax.block_until_ready(out3)
    assert out3.shape == (B, 2, D, 7, 7), out3.shape
    assert jnp.allclose(out3, _reference(x, ks3, st3)), "config-3 mismatch"

    print("KERNEL_OK")
</pallas_src>

<mosaic_0001>
module attributes {stable_mosaic.version = 11 : i64} {
  func.func @kernel(%arg0: i32, %arg1: i32, %arg2: memref<1x4x2048xf32, #tpu.memory_space<vmem>>, %arg3: memref<1x1x2048xf32, #tpu.memory_space<vmem>>) attributes {dimension_semantics = [#tpu.dimension_semantics<parallel>, #tpu.dimension_semantics<parallel>], iteration_bounds = array<i64: 2, 1>, scalar_prefetch = 0 : i64, scratch_operands = 0 : i64, tpu.core_type = #tpu.core_type<tc>, window_params = [{transform_indices = @transform_0, window_bounds = array<i64: 1, 4, 2048>}, {transform_indices = @transform_1, window_bounds = array<i64: 1, 1, 2048>}]} {
    %c0 = arith.constant 0 : index
    %c0_0 = arith.constant 0 : index
    %c0_1 = arith.constant 0 : index
    %0 = vector.load %arg2[%c0, %c0_0, %c0_1] : memref<1x4x2048xf32, #tpu.memory_space<vmem>>, vector<1x1x2048xf32>
    %c0_2 = arith.constant 0 : index
    %c1 = arith.constant 1 : index
    %c0_3 = arith.constant 0 : index
    %1 = vector.load %arg2[%c0_2, %c1, %c0_3] : memref<1x4x2048xf32, #tpu.memory_space<vmem>>, vector<1x1x2048xf32>
    %2 = arith.maximumf %0, %1 : vector<1x1x2048xf32>
    %c0_4 = arith.constant 0 : index
    %c2 = arith.constant 2 : index
    %c0_5 = arith.constant 0 : index
    %3 = vector.load %arg2[%c0_4, %c2, %c0_5] : memref<1x4x2048xf32, #tpu.memory_space<vmem>>, vector<1x1x2048xf32>
    %4 = arith.maximumf %2, %3 : vector<1x1x2048xf32>
    %c0_6 = arith.constant 0 : index
    %c3 = arith.constant 3 : index
    %c0_7 = arith.constant 0 : index
    %5 = vector.load %arg2[%c0_6, %c3, %c0_7] : memref<1x4x2048xf32, #tpu.memory_space<vmem>>, vector<1x1x2048xf32>
    %6 = arith.maximumf %4, %5 : vector<1x1x2048xf32>
    %c0_8 = arith.constant 0 : index
    %c0_9 = arith.constant 0 : index
    %c0_10 = arith.constant 0 : index
    %7 = vector.load %arg3[%c0_8, %c0_9, %c0_10] : memref<1x1x2048xf32, #tpu.memory_space<vmem>>, vector<1x1x2048xf32>
    tpu.vector_store %arg3[%c0_8, %c0_9, %c0_10], %6 {strides = array<i32>} : memref<1x1x2048xf32, #tpu.memory_space<vmem>>, vector<1x1x2048xf32>,
    return
  }
  func.func @transform_0(%arg0: i32, %arg1: i32) -> (i32, i32, i32) {
    %c0_i32 = arith.constant 0 : i32
    %c0_i32_0 = arith.constant 0 : i32
    return %arg0, %c0_i32, %arg1 : i32, i32, i32
  }
  func.func @transform_1(%arg0: i32, %arg1: i32) -> (i32, i32, i32) {
    %c0_i32 = arith.constant 0 : i32
    %c0_i32_0 = arith.constant 0 : i32
    return %arg0, %c0_i32, %arg1 : i32, i32, i32
  }
}

</mosaic_0001>

<bundles_post_ra>
// kernel: a_call__.1
= control target key start
LH: loop header
LB: loop body
LE: loop exit
PB: predicated region body
PF: predicated region fallthrough
CT: control target
= control target key end

     0   :  { %s334_s6 = smov 0   ;;  %s336_s7 = smov 0   ;;  %s364_s0 = inlined_call_operand.vmem [shape: f32[2,4,2048], index: 0, kind: input, shape index: {}]   ;;  %s365_s1 = inlined_call_operand.vmem [shape: f32[2,1,2048], index: 1, kind: output, shape index: {}]  }
   0x1   :  { %s338_s8 = smov 0  }
   0x2 LB: > { %s23_s9 = sadd.s32 1, %s318_s7  ;;  %p262_p0 = scmp.ge.s32.totalorder %s322_s8, 1  ;;  %s322_s8 = sphi %s338_s8, %s11_s8   ;;  %s318_s7 = sphi %s336_s7, %s367_s7   ;;  %s314_s6 = sphi %s334_s6, %s366_s6  }
   0x3   : > { %p25_p1 = scmp.ge.s32.totalorder %s23_s9, 2  ;;  %p108_p2 = scmp.lt.s32.totalorder %s322_s8, 3 }
   0x5   : > { %s369_s9 = smov (%p25_p1, %s23_s9), 0  ;;  %p109_p3 = pnand %p262_p0, %p108_p2 }
   0x6   : > { %p136_p4 = scmp.lt.s32.totalorder (!%p109_p3), %s314_s6, 1 }
   0x7   : > { %112 = sbr.rel (%p109_p3) target bundleno = 24 (0x18), region = 24 }
   0xc   : > { %s371_s6 = smov (!%p136_p4, %s314_s6), 1 }
   0xd   : > { %s275_s10 = sshll.u32 %s371_s6, 6  ;;  %s265_s14 = sshll.u32 %s371_s6, 4 }
   0xe   : > { %s143_s13 = scalar_lea.vmem %s364_s0, %s275_s10  ;;  %s152_s17 = scalar_lea.vmem %s365_s1, %s265_s14 }
   0xf   : > { %v154_v0 = vld [vmem:[%s143_s13] ss:$4 sm:$0xff]  ;;  %v267_v1 = vld [vmem:[%s143_s13 + $0x1] ss:$4 sm:$0xff]  ;;  %v269_v2 = vld [vmem:[%s143_s13 + $0x2] ss:$4 sm:$0xff] }
  0x10   : > { %v161_v3 = vmax.f32 %v154_v0, %v267_v1  ;;  %v266_v4 = vld [vmem:[%s143_s13 + $0x20] ss:$4 sm:$0xff]  ;;  %v268_v5 = vld [vmem:[%s143_s13 + $0x21] ss:$4 sm:$0xff]  ;;  %v271_v6 = vld [vmem:[%s143_s13 + $0x3] ss:$4 sm:$0xff] }
  0x11   : > { %v162_v7 = vmax.f32 %v266_v4, %v268_v5  ;;  %v270_v8 = vld [vmem:[%s143_s13 + $0x22] ss:$4 sm:$0xff]  ;;  %v272_v10 = vld [vmem:[%s143_s13 + $0x23] ss:$4 sm:$0xff] }
  0x12   : > { %v167_v9 = vmax.f32 %v161_v3, %v269_v2 }
  0x13   : > { %v168_v11 = vmax.f32 %v162_v7, %v270_v8 }
  0x14   : > { %v173_v12 = vmax.f32 %v167_v9, %v271_v6 }
  0x15   : > { %v174_v13 = vmax.f32 %v168_v11, %v272_v10 }
  0x16   : > { %175 = vst [vmem:[%s152_s17] sm:$0xff] %v173_v12 }
  0x17   : > { %176 = vst [vmem:[%s152_s17 + $0x8] sm:$0xff] %v174_v13 }
  0x18 PF: > { %s11_s8 = sadd.s32 1, %s322_s8   ;;  %s366_s6 = smov %s318_s7 }
  0x19   : > { %p8_p5 = scmp.ge.s32.totalorder %s11_s8, 4   ;;  %s367_s7 = smov %s369_s9 }
  0x1b   :  { %10 = sbr.rel (!%p8_p5) target bundleno = 2 (0x2), region = 61 }

</bundles_post_ra>
